<compile_context>
chip_gen: v6e
topology: v6e:2x2x1
jax: 0.10.0
libtpu: 0.0.40
codegen_flags: <defaults>
</compile_context>

<pallas_src>
import functools

import jax
import jax.numpy as jnp
from jax.experimental import pallas as pl
from jax.experimental.pallas import tpu as pltpu

_VMEM_LIMIT_BYTES = 32 * 1024 * 1024   # fits v5e/v6e/v7x scoped-VMEM budgets


def _round_up(v: int, m: int) -> int:
    return (v + m - 1) // m * m


def _mlp_fused_kernel(*refs, num_layers: int, relu_flags: tuple):
    """Fused multi-layer MLP on one (TB, K0p) batch tile.

    refs = (x_ref, w_0..w_{L-1}, b_0..b_{L-1}, o_ref)
      x_ref : (TB, K0p)  native input dtype (f32/bf16) -- cast to bf16 on-chip
      w_l   : (K_l, N_l) bf16   (VMEM-resident across all grid steps)
      b_l   : (1,  N_l)  f32
      o_ref : (TB, N_out)
    """
    x_ref = refs[0]
    w_refs = refs[1:1 + num_layers]
    b_refs = refs[1 + num_layers:1 + 2 * num_layers]
    o_ref = refs[1 + 2 * num_layers]

    # On-chip bf16 cast: x streams from HBM once, in its native dtype.
    h = x_ref[...].astype(jnp.bfloat16)
    acc = None
    # TODO(synk): if tb_max is ever raised past ~256, stage `acc` in a VMEM
    # scratch to keep regalloc spill pressure off the vector-store slot.
    for li in range(num_layers):
        # bf16 x bf16 -> f32 accumulate on the MXU.
        acc = jnp.dot(h, w_refs[li][...], preferred_element_type=jnp.float32)
        acc = acc + b_refs[li][...]             # f32 epilogue
        if relu_flags[li]:
            acc = jnp.maximum(acc, 0.0)
        if li + 1 < num_layers:
            h = acc.astype(jnp.bfloat16)        # feed next matmul in bf16
    o_ref[...] = acc.astype(o_ref.dtype)


def prepare_mlp_params(params):
    """Pad feature dims to 128-lane multiples and cast weights to bf16 ONCE.

    Hoisted out of the per-call path so each forward call does not re-read the
    f32 weights and rewrite padded bf16 copies to HBM.
    params: list of (W (in, out) f32, b (out,) f32).
    """
    ws, bs = [], []
    for w, b in params:
        kp = _round_up(w.shape[0], 128)
        np_ = _round_up(w.shape[1], 128)
        wp = jnp.zeros((kp, np_), jnp.bfloat16)
        wp = wp.at[:w.shape[0], :w.shape[1]].set(w.astype(jnp.bfloat16))
        bp = jnp.zeros((1, np_), jnp.float32)
        bp = bp.at[0, :b.shape[0]].set(b.astype(jnp.float32))
        ws.append(wp)
        bs.append(bp)
    return ws, bs


def mlp_forward(x, ws, bs, *, out_dim, tb_max: int = 256,
                out_dtype=jnp.float32, single_buffer_weights: bool = False):
    """x: (B, C, H, W) -> (B, out_dim). ws/bs: outputs of prepare_mlp_params."""
    B = x.shape[0]
    x2 = x.reshape(B, -1)                       # x.view(x.size(0), -1)
    K0 = x2.shape[1]
    num_layers = len(ws)
    Kp = ws[0].shape[0]                         # padded contraction dim
    pout = [w.shape[1] for w in ws]             # padded output dims

    # --- batch tile: multiple of 8 sublanes; >= 2 grid steps for v7x -------
    TB = min(tb_max, _round_up(B, 8))
    Bp = _round_up(B, TB)
    if Bp // TB < 2:                            # give both v7x TCs a grid step
        TB = max(8, _round_up(TB // 2, 8))
        Bp = _round_up(B, 2 * TB)

    # --- pad x only when necessary (no extra HBM pass in the aligned case) -
    if (Bp != B) or (Kp != K0):
        xp = jnp.zeros((Bp, Kp), x2.dtype)
        xp = xp.at[:B, :K0].set(x2)
    else:
        xp = x2

    # --- VMEM budget guard: resident weights + streamed tiles ---------------
    w_bufs = 1 if single_buffer_weights else 2
    resident = (sum(int(w.size) * w.dtype.itemsize for w in ws)
                + sum(int(b.size) * b.dtype.itemsize for b in bs))
    streamed = (TB * Kp * xp.dtype.itemsize
                + TB * pout[-1] * jnp.dtype(out_dtype).itemsize)
    assert w_bufs * resident + 2 * streamed < _VMEM_LIMIT_BYTES, (
        "resident weights + streamed tiles exceed the VMEM budget")

    relu_flags = tuple(li != num_layers - 1 for li in range(num_layers))
    kernel = functools.partial(_mlp_fused_kernel,
                               num_layers=num_layers,
                               relu_flags=relu_flags)

    # --- BlockSpecs ---------------------------------------------------------
    # x / out: tiled over the batch grid axis; weights / biases: constant
    # index_map -> stay resident in VMEM across every grid step.
    def _resident_spec(shape):
        if single_buffer_weights:
            # Constant index_map -> never re-DMA'd; no need to double-buffer.
            return pl.BlockSpec(shape, lambda i: (0, 0),
                                pipeline_mode=pl.Buffered(1))
        return pl.BlockSpec(shape, lambda i: (0, 0))

    in_specs = [pl.BlockSpec((TB, Kp), lambda i: (i, 0))]
    in_specs += [_resident_spec(w.shape) for w in ws]
    in_specs += [_resident_spec(b.shape) for b in bs]
    out_specs = pl.BlockSpec((TB, pout[-1]), lambda i: (i, 0))

    out_padded = pl.pallas_call(
        kernel,
        out_shape=jax.ShapeDtypeStruct((Bp, pout[-1]), out_dtype),
        grid_spec=pltpu.PrefetchScalarGridSpec(
            num_scalar_prefetch=0,
            grid=(Bp // TB,),
            in_specs=in_specs,
            out_specs=out_specs,
        ),
        compiler_params=pltpu.CompilerParams(
            dimension_semantics=("parallel",),
            vmem_limit_bytes=_VMEM_LIMIT_BYTES,
        ),
    )(xp, *ws, *bs)

    return out_padded[:B, :out_dim]


def init_mlp_params(key, input_dim, output_dim, dim, num_block=1,
                    dtype=jnp.float32):
    """Deterministic synthetic parameters matching the MLP's layer shapes."""
    dims = [input_dim] + [dim] * (1 + num_block) + [output_dim]
    params = []
    for i in range(len(dims) - 1):
        key, kw, kb = jax.random.split(key, 3)
        fan_in = dims[i]
        bound = 1.0 / float(jnp.sqrt(fan_in))
        w = jax.random.uniform(kw, (dims[i], dims[i + 1]),
                               minval=-bound, maxval=bound, dtype=dtype)
        b = jax.random.uniform(kb, (dims[i + 1],),
                               minval=-bound, maxval=bound, dtype=dtype)
        params.append((w, b))
    return params


if __name__ == "__main__":
    key = jax.random.PRNGKey(0)
    kx, kp = jax.random.split(key)

    # Small example consistent with forward(x.view(B, -1)).
    B, C, H, W = 2, 4, 16, 16
    input_dim = C * H * W               # 1024 (already 128-aligned -> no x copy beyond batch pad)
    dim = 32
    output_dim = 16
    num_block = 1

    x = jax.random.normal(kx, (B, C, H, W), dtype=jnp.float32)
    params = init_mlp_params(kp, input_dim, output_dim, dim,
                             num_block=num_block)

    # One-time padding / bf16 cast of the weights (hoisted out of forward).
    ws, bs = prepare_mlp_params(params)

    fwd = jax.jit(functools.partial(mlp_forward, out_dim=output_dim))
    out = fwd(x, ws, bs)
    jax.block_until_ready(out)

    # Plain-JAX f32 reference (tolerance loosened for bf16 matmul inputs,
    # accumulation inside the kernel is f32).
    ref = x.reshape(B, -1)
    for idx, (w, b) in enumerate(params):
        ref = ref @ w + b
        if idx != len(params) - 1:
            ref = jnp.maximum(ref, 0.0)

    assert out.shape == (B, output_dim)
    assert jnp.allclose(out, ref, atol=3e-2, rtol=3e-2), (
        float(jnp.max(jnp.abs(out - ref))))

    print("KERNEL_OK")
</pallas_src>

<mosaic_0001>
module attributes {stable_mosaic.version = 11 : i64} {
  func.func @_mlp_fused_kernel(%arg0: i32, %arg1: memref<8x1024xf32, #tpu.memory_space<vmem>>, %arg2: memref<1024x128xbf16, #tpu.memory_space<vmem>>, %arg3: memref<128x128xbf16, #tpu.memory_space<vmem>>, %arg4: memref<128x128xbf16, #tpu.memory_space<vmem>>, %arg5: memref<1x128xf32, #tpu.memory_space<vmem>>, %arg6: memref<1x128xf32, #tpu.memory_space<vmem>>, %arg7: memref<1x128xf32, #tpu.memory_space<vmem>>, %arg8: memref<8x128xf32, #tpu.memory_space<vmem>>) attributes {dimension_semantics = [#tpu.dimension_semantics<parallel>], iteration_bounds = array<i64: 2>, scalar_prefetch = 0 : i64, scratch_operands = 0 : i64, tpu.core_type = #tpu.core_type<tc>, window_params = [{transform_indices = @transform_0, window_bounds = array<i64: 8, 1024>}, {pipeline_mode = #tpu.pipeline_mode<synchronous>, transform_indices = @transform_1, window_bounds = array<i64: 1024, 128>}, {pipeline_mode = #tpu.pipeline_mode<synchronous>, transform_indices = @transform_2, window_bounds = array<i64: 128, 128>}, {pipeline_mode = #tpu.pipeline_mode<synchronous>, transform_indices = @transform_3, window_bounds = array<i64: 128, 128>}, {pipeline_mode = #tpu.pipeline_mode<synchronous>, transform_indices = @transform_4, window_bounds = array<i64: 1, 128>}, {pipeline_mode = #tpu.pipeline_mode<synchronous>, transform_indices = @transform_5, window_bounds = array<i64: 1, 128>}, {pipeline_mode = #tpu.pipeline_mode<synchronous>, transform_indices = @transform_6, window_bounds = array<i64: 1, 128>}, {transform_indices = @transform_7, window_bounds = array<i64: 8, 128>}]} {
    %c0 = arith.constant 0 : index
    %c0_0 = arith.constant 0 : index
    %0 = vector.load %arg1[%c0, %c0_0] : memref<8x1024xf32, #tpu.memory_space<vmem>>, vector<8x1024xf32>
    %1 = arith.truncf %0 : vector<8x1024xf32> to vector<8x1024xbf16>
    %c0_1 = arith.constant 0 : index
    %c0_2 = arith.constant 0 : index
    %2 = vector.load %arg2[%c0_1, %c0_2] : memref<1024x128xbf16, #tpu.memory_space<vmem>>, vector<1024x128xbf16>
    %cst = arith.constant dense<0.000000e+00> : vector<8x128xf32>
    %3 = tpu.matmul %1, %2, %cst {dimension_numbers = #tpu.dot_dimension_numbers<[1], [0], [0], [1], [0, 0, 1, 1], [], []>} : vector<8x1024xbf16>, vector<1024x128xbf16>, vector<8x128xf32> -> vector<8x128xf32>
    %c0_3 = arith.constant 0 : index
    %c0_4 = arith.constant 0 : index
    %4 = vector.load %arg5[%c0_3, %c0_4] : memref<1x128xf32, #tpu.memory_space<vmem>>, vector<1x128xf32>
    %5 = vector.broadcast %4 : vector<1x128xf32> to vector<8x128xf32>
    %6 = arith.addf %3, %5 : vector<8x128xf32>
    %cst_5 = arith.constant 0.000000e+00 : f32
    %7 = vector.broadcast %cst_5 : f32 to vector<8x128xf32>
    %8 = arith.maximumf %6, %7 : vector<8x128xf32>
    %9 = arith.truncf %8 : vector<8x128xf32> to vector<8x128xbf16>
    %c0_6 = arith.constant 0 : index
    %c0_7 = arith.constant 0 : index
    %10 = vector.load %arg3[%c0_6, %c0_7] : memref<128x128xbf16, #tpu.memory_space<vmem>>, vector<128x128xbf16>
    %cst_8 = arith.constant dense<0.000000e+00> : vector<8x128xf32>
    %11 = tpu.matmul %9, %10, %cst_8 {dimension_numbers = #tpu.dot_dimension_numbers<[1], [0], [0], [1], [0, 0, 1, 1], [], []>} : vector<8x128xbf16>, vector<128x128xbf16>, vector<8x128xf32> -> vector<8x128xf32>
    %c0_9 = arith.constant 0 : index
    %c0_10 = arith.constant 0 : index
    %12 = vector.load %arg6[%c0_9, %c0_10] : memref<1x128xf32, #tpu.memory_space<vmem>>, vector<1x128xf32>
    %13 = vector.broadcast %12 : vector<1x128xf32> to vector<8x128xf32>
    %14 = arith.addf %11, %13 : vector<8x128xf32>
    %cst_11 = arith.constant 0.000000e+00 : f32
    %15 = vector.broadcast %cst_11 : f32 to vector<8x128xf32>
    %16 = arith.maximumf %14, %15 : vector<8x128xf32>
    %17 = arith.truncf %16 : vector<8x128xf32> to vector<8x128xbf16>
    %c0_12 = arith.constant 0 : index
    %c0_13 = arith.constant 0 : index
    %18 = vector.load %arg4[%c0_12, %c0_13] : memref<128x128xbf16, #tpu.memory_space<vmem>>, vector<128x128xbf16>
    %cst_14 = arith.constant dense<0.000000e+00> : vector<8x128xf32>
    %19 = tpu.matmul %17, %18, %cst_14 {dimension_numbers = #tpu.dot_dimension_numbers<[1], [0], [0], [1], [0, 0, 1, 1], [], []>} : vector<8x128xbf16>, vector<128x128xbf16>, vector<8x128xf32> -> vector<8x128xf32>
    %c0_15 = arith.constant 0 : index
    %c0_16 = arith.constant 0 : index
    %20 = vector.load %arg7[%c0_15, %c0_16] : memref<1x128xf32, #tpu.memory_space<vmem>>, vector<1x128xf32>
    %21 = vector.broadcast %20 : vector<1x128xf32> to vector<8x128xf32>
    %22 = arith.addf %19, %21 : vector<8x128xf32>
    %c0_17 = arith.constant 0 : index
    %c0_18 = arith.constant 0 : index
    %23 = vector.load %arg8[%c0_17, %c0_18] : memref<8x128xf32, #tpu.memory_space<vmem>>, vector<8x128xf32>
    tpu.vector_store %arg8[%c0_17, %c0_18], %22 {strides = array<i32>} : memref<8x128xf32, #tpu.memory_space<vmem>>, vector<8x128xf32>,
    return
  }
  func.func @transform_0(%arg0: i32) -> (i32, i32) {
    %c0_i32 = arith.constant 0 : i32
    %c0_i32_0 = arith.constant 0 : i32
    return %arg0, %c0_i32 : i32, i32
  }
  func.func @transform_1(%arg0: i32) -> (i32, i32) {
    %c0_i32 = arith.constant 0 : i32
    %c0_i32_0 = arith.constant 0 : i32
    %c0_i32_1 = arith.constant 0 : i32
    return %c0_i32, %c0_i32_0 : i32, i32
  }
  func.func @transform_2(%arg0: i32) -> (i32, i32) {
    %c0_i32 = arith.constant 0 : i32
    %c0_i32_0 = arith.constant 0 : i32
    %c0_i32_1 = arith.constant 0 : i32
    return %c0_i32, %c0_i32_0 : i32, i32
  }
  func.func @transform_3(%arg0: i32) -> (i32, i32) {
    %c0_i32 = arith.constant 0 : i32
    %c0_i32_0 = arith.constant 0 : i32
    %c0_i32_1 = arith.constant 0 : i32
    return %c0_i32, %c0_i32_0 : i32, i32
  }
  func.func @transform_4(%arg0: i32) -> (i32, i32) {
    %c0_i32 = arith.constant 0 : i32
    %c0_i32_0 = arith.constant 0 : i32
    %c0_i32_1 = arith.constant 0 : i32
    return %c0_i32, %c0_i32_0 : i32, i32
  }
  func.func @transform_5(%arg0: i32) -> (i32, i32) {
    %c0_i32 = arith.constant 0 : i32
    %c0_i32_0 = arith.constant 0 : i32
    %c0_i32_1 = arith.constant 0 : i32
    return %c0_i32, %c0_i32_0 : i32, i32
  }
  func.func @transform_6(%arg0: i32) -> (i32, i32) {
    %c0_i32 = arith.constant 0 : i32
    %c0_i32_0 = arith.constant 0 : i32
    %c0_i32_1 = arith.constant 0 : i32
    return %c0_i32, %c0_i32_0 : i32, i32
  }
  func.func @transform_7(%arg0: i32) -> (i32, i32) {
    %c0_i32 = arith.constant 0 : i32
    %c0_i32_0 = arith.constant 0 : i32
    return %arg0, %c0_i32 : i32, i32
  }
}

</mosaic_0001>

<bundles_post_ra>
// kernel: mlp_forward.1
= control target key start
LH: loop header
LB: loop body
LE: loop exit
PB: predicated region body
PF: predicated region fallthrough
CT: control target
= control target key end

     0   :  { %12 = vsyncpa [#allocation3], 0  ;;  %s1708_s24 = smov 0   ;;  %s1836_s0 = inlined_call_operand.vmem [shape: f32[16,1024], index: 0, kind: input, shape index: {}]   ;;  %s1837_s1 = inlined_call_operand.hbm [shape: bf16[1024,128], index: 1, kind: input, shape index: {}]   ;;  %s1838_s2 = inlined_call_operand.vmem [shape: bf16[128,128], index: 2, kind: input, shape index: {}]   ;;  %s1839_s3 = inlined_call_operand.vmem [shape: bf16[128,128], index: 3, kind: input, shape index: {}]   ;;  %s1840_s4 = inlined_call_operand.vmem [shape: f32[1,128], index: 4, kind: input, shape index: {}]   ;;  %s1841_s5 = inlined_call_operand.vmem [shape: f32[1,128], index: 5, kind: input, shape index: {}]   ;;  %s1842_s6 = inlined_call_operand.vmem [shape: f32[1,128], index: 6, kind: input, shape index: {}]   ;;  %s1843_s7 = inlined_call_operand.vmem [shape: f32[16,128], index: 7, kind: output, shape index: {}]  }
   0x1 LB: > { %s1714_s25 = sadd.s32 4294967295, %s1661_s24   ;;  %p1282_p0 = scmp.ge.s32.totalorder %s1661_s24, 1  ;;  %s1661_s24 = sphi %s1708_s24, %s18_s24  }
   0x2   : > { %p201_p1 = scmp.lt.s32.totalorder %s1661_s24, 3  ;;  %s1663_s26 = smov [#allocation2]  }
   0x3   : > { %s213_s27 = sshll.u32 %s1663_s26, 4  ;;  %p1530_p3 = scmp.eq.s32.totalorder %s1714_s25, 0  ;;  %s214_s27 = int_to_ptr.vmem [resolvable:$true] %s213_s27 }
   0x4   : > { %p1718_p2 = pnand %p1282_p0, %p201_p1  ;;  %s1636_s29 = scalar_lea.vmem %s214_s27, 8192 }
   0x5   : > { %p1637_p7 = scmp.ne.s32.totalorder %s214_s27, %s1636_s29  ;;  %p1644_p10 = scmp.lt.s32.totalorder %s214_s27, %s214_s27 }
   0x6   : > { %p1526_p4 = pneg %p1718_p2  ;;  %p1645_p11 = scmp.lt.s32.totalorder %s1636_s29, %s1636_s29 }
   0x8   : > { %p1527_p5 = pnand %p1530_p3, %p1526_p4  ;;  %p1646_p12 = por %p1645_p11, %p1644_p10 }
   0xa   : > { %p1627_p6 = pneg %p1527_p5 }
   0xc   : > { %p1639_p8 = pnand %p1637_p7, %p1627_p6 }
   0xe   : > { %p1640_p9 = pneg %p1639_p8 }
  0x10   : > { %p1647_p13 = pnand %p1646_p12, %p1640_p9 }
  0x12   : > { %1650 = shalt.err (!%p1647_p13)
}
  0x13   : > { %s1664_s30 = smov 64   ;;  %s1665_s8 = smov 4  }
  0x14   : > { %1529 = dma.hbm_to_vmem [thread:$0]  (!%p1527_p5), %s1837_s1, 8192, %s214_s27, [#allocation3], %s1664_s30, %s1664_s30, %s1665_s8  }
  0x15   : > { %252 = sbr.rel (%p1718_p2) target bundleno = 696 (0x2b8), region = 48 }
  0x1a   : > { %1656 = dma.done.wait (%p1530_p3), [#allocation3], 8192  }
  0x1b   : > { %1658 = vsyncadd (%p1530_p3), [#allocation3], 4294959104  ;;  %v1545_v0 = vld [vmem:[#allocation2 + $0x78] sm:$0xff]   ;;  %v1549_v4 = vld [vmem:[#allocation2 + $0x70] sm:$0xff]   ;;  %p283_p0 = scmp.lt.s32.totalorder %s1714_s25, 1  ;;  %vm1667_vm0 = vmmov 0  }
  0x1c   : > { %v1546_v1 = vld [vmem:[#allocation2 + $0xf8] sm:$0xff]   ;;  %1376 = vmatprep.subr.bf16.mxu0 %v1545_v0  ;;  %v1550_v5 = vld [vmem:[#allocation2 + $0xf0] sm:$0xff]   ;;  %v1553_v8 = vld [vmem:[#allocation2 + $0x68] sm:$0xff]  }
  0x1d   : > { %v1547_v2 = vld [vmem:[#allocation2 + $0x38] sm:$0xff]   ;;  %1398 = vmatprep.subr.bf16.mxu1 %v1546_v1  ;;  %v1551_v6 = vld [vmem:[#allocation2 + $0x30] sm:$0xff]   ;;  %v1554_v9 = vld [vmem:[#allocation2 + $0xe8] sm:$0xff]   ;;  %s1846_s25 = smov (!%p283_p0, %s1714_s25), 1 }
  0x1e   : > { %v1548_v3 = vld [vmem:[#allocation2 + $0xb8] sm:$0xff]   ;;  %1377 = vmatpush3.bf16.msra.mxu0 %v1547_v2  ;;  %v1552_v7 = vld [vmem:[#allocation2 + $0xb0] sm:$0xff]   ;;  %v1555_v10 = vld [vmem:[#allocation2 + $0x28] sm:$0xff]   ;;  %s1375_s11 = sshll.u32 %s1846_s25, 6  ;;  %s1289_s9 = sshll.u32 %s1846_s25, 3 }
  0x1f   : > { %1399 = vmatpush3.bf16.msra.mxu1 %v1548_v3  ;;  %1378 = vmatprep.subr.bf16.mxu0 %v1549_v4  ;;  %v1556_v11 = vld [vmem:[#allocation2 + $0xa8] sm:$0xff]   ;;  %v1557_v12 = vld [vmem:[#allocation2 + $0x60] sm:$0xff]   ;;  %v1561_v16 = vld [vmem:[#allocation2 + $0x58] sm:$0xff]   ;;  %s1744_s14 = scalar_lea.vmem %s1836_s0, %s1375_s11 }
  0x20   : > { %1400 = vmatprep.subr.bf16.mxu1 %v1550_v5  ;;  %v1558_v13 = vld [vmem:[#allocation2 + $0xe0] sm:$0xff]   ;;  %v1562_v17 = vld [vmem:[#allocation2 + $0xd8] sm:$0xff]   ;;  %v1565_v20 = vld [vmem:[#allocation2 + $0x50] sm:$0xff]  }
  0x21   : > { %v1559_v14 = vld [vmem:[#allocation2 + $0x20] sm:$0xff]   ;;  %v1563_v18 = vld [vmem:[#allocation2 + $0x18] sm:$0xff]   ;;  %v1566_v21 = vld [vmem:[#allocation2 + $0xd0] sm:$0xff]  }
  0x22   : > { %1379 = vmatpush3.bf16.msra.mxu0 %v1551_v6  ;;  %v1560_v15 = vld [vmem:[#allocation2 + $0xa0] sm:$0xff]   ;;  %v1564_v19 = vld [vmem:[#allocation2 + $0x98] sm:$0xff]   ;;  %v1567_v22 = vld [vmem:[#allocation2 + $0x10] sm:$0xff]  }
  0x23   : > { %1401 = vmatpush3.bf16.msra.mxu1 %v1552_v7  ;;  %1380 = vmatprep.subr.bf16.mxu0 %v1553_v8  ;;  %v1568_v23 = vld [vmem:[#allocation2 + $0x90] sm:$0xff]   ;;  %v1569_v24 = vld [vmem:[#allocation2 + $0x48] sm:$0xff]   ;;  %v1573_v28 = vld [vmem:[#allocation2 + $0x40] sm:$0xff]  }
  0x24   : > { %1402 = vmatprep.subr.bf16.mxu1 %v1554_v9  ;;  %v1570_v25 = vld [vmem:[#allocation2 + $0xc8] sm:$0xff]   ;;  %v1574_v29 = vld [vmem:[#allocation2 + $0xc0] sm:$0xff]   ;;  %v296_v33 = vld [vmem:[%s1744_s14 + $0x18] sm:$0xff] }
  0x25   : > { %v1571_v26 = vld [vmem:[#allocation2 + $0x8] sm:$0xff]   ;;  %v1575_v30 = vld [vmem:[#allocation2] sm:$0xff]   ;;  %v304_v36 = vpack.c.bf16 %v296_v33, %v296_v33  ;;  %v295_v38 = vld [vmem:[%s1744_s14 + $0x10] sm:$0xff] }
  0x26   : > { %1381 = vmatpush3.bf16.msra.mxu0 %v1555_v10  ;;  %v1572_v27 = vld [vmem:[#allocation2 + $0x88] sm:$0xff]   ;;  %v1576_v31 = vld [vmem:[#allocation2 + $0x80] sm:$0xff]   ;;  %v303_v39 = vpack.c.bf16 %v295_v38, %v295_v38  ;;  %v1577_v40 = vld [vmem:[#allocation2 + $0x178] sm:$0xff]  }
  0x27   : > { %1403 = vmatpush3.bf16.msra.mxu1 %v1556_v11  ;;  %1382 = vmatprep.subr.bf16.mxu0 %v1557_v12  ;;  %v294_v32 = vld [vmem:[%s1744_s14 + $0x8] sm:$0xff]  ;;  %v293_v34 = vld [vmem:[%s1744_s14] sm:$0xff]  ;;  %v1578_v41 = vld [vmem:[#allocation2 + $0x1f8] sm:$0xff]  }
  0x28   : > { %1404 = vmatprep.subr.bf16.mxu1 %v1558_v13  ;;  %v302_v35 = vpack.c.bf16 %v294_v32, %v294_v32  ;;  %v301_v37 = vpack.c.bf16 %v293_v34, %v293_v34  ;;  %900 = vmatprep.mubr.bf16.mxu1 %v304_v36  ;;  %v1579_v42 = vld [vmem:[#allocation2 + $0x138] sm:$0xff]   ;;  %v1581_v44 = vld [vmem:[#allocation2 + $0x170] sm:$0xff]   ;;  %v1585_v48 = vld [vmem:[#allocation2 + $0x168] sm:$0xff]  }
  0x29   : > { %v1580_v43 = vld [vmem:[#allocation2 + $0x1b8] sm:$0xff]   ;;  %v1582_v45 = vld [vmem:[#allocation2 + $0x1f0] sm:$0xff]   ;;  %v1586_v49 = vld [vmem:[#allocation2 + $0x1e8] sm:$0xff]  }
  0x2a   : > { %1383 = vmatpush3.bf16.msra.mxu0 %v1559_v14  ;;  %860 = vmatprep.mubr.bf16.mxu0 %v302_v35  ;;  %v1583_v46 = vld [vmem:[#allocation2 + $0x130] sm:$0xff]   ;;  %v1587_v50 = vld [vmem:[#allocation2 + $0x128] sm:$0xff]   ;;  %v1589_v52 = vld [vmem:[#allocation2 + $0x160] sm:$0xff]  }
  0x2b   : > { %1405 = vmatpush3.bf16.msra.mxu1 %v1560_v15  ;;  %1384 = vmatprep.subr.bf16.mxu0 %v1561_v16  ;;  %v1584_v47 = vld [vmem:[#allocation2 + $0x1b0] sm:$0xff]   ;;  %v1588_v51 = vld [vmem:[#allocation2 + $0x1a8] sm:$0xff]   ;;  %v1590_v53 = vld [vmem:[#allocation2 + $0x1e0] sm:$0xff]  }
  0x2c   : > { %1406 = vmatprep.subr.bf16.mxu1 %v1562_v17  ;;  %v1591_v54 = vld [vmem:[#allocation2 + $0x120] sm:$0xff]   ;;  %v1593_v56 = vld [vmem:[#allocation2 + $0x158] sm:$0xff]   ;;  %v1597_v60 = vld [vmem:[#allocation2 + $0x150] sm:$0xff]   ;;  %v1666_v17 = vmov 0.0  }
  0x2d   : > { %v1592_v55 = vld [vmem:[#allocation2 + $0x1a0] sm:$0xff]   ;;  %v1594_v57 = vld [vmem:[#allocation2 + $0x1d8] sm:$0xff]   ;;  %v1598_v61 = vld [vmem:[#allocation2 + $0x1d0] sm:$0xff]  }
  0x2e   : > { %1385 = vmatpush3.bf16.msra.mxu0 %v1563_v18  ;;  %v1595_v58 = vld [vmem:[#allocation2 + $0x118] sm:$0xff]   ;;  %v1599_v62 = vld [vmem:[#allocation2 + $0x110] sm:$0xff]   ;;  %v1601_v0 = vld [vmem:[#allocation2 + $0x148] sm:$0xff]  }
  0x2f   : > { %1407 = vmatpush3.bf16.msra.mxu1 %v1564_v19  ;;  %1386 = vmatprep.subr.bf16.mxu0 %v1565_v20  ;;  %v1596_v59 = vld [vmem:[#allocation2 + $0x198] sm:$0xff]   ;;  %v1600_v63 = vld [vmem:[#allocation2 + $0x190] sm:$0xff]   ;;  %v1602_v1 = vld [vmem:[#allocation2 + $0x1c8] sm:$0xff]  }
  0x30   : > { %1408 = vmatprep.subr.bf16.mxu1 %v1566_v21  ;;  %v1603_v2 = vld [vmem:[#allocation2 + $0x108] sm:$0xff]   ;;  %v1605_v4 = vld [vmem:[#allocation2 + $0x140] sm:$0xff]   ;;  %v300_v9 = vld [vmem:[%s1744_s14 + $0x38] sm:$0xff] }
  0x31   : > { %v1604_v3 = vld [vmem:[#allocation2 + $0x188] sm:$0xff]   ;;  %v1606_v5 = vld [vmem:[#allocation2 + $0x1c0] sm:$0xff]   ;;  %v308_v11 = vpack.c.bf16 %v300_v9, %v300_v9  ;;  %v299_v13 = vld [vmem:[%s1744_s14 + $0x30] sm:$0xff] }
  0x32   : > { %1387 = vmatpush3.bf16.msra.mxu0 %v1567_v22  ;;  %v1607_v6 = vld [vmem:[#allocation2 + $0x100] sm:$0xff]   ;;  %v298_v8 = vld [vmem:[%s1744_s14 + $0x28] sm:$0xff]  ;;  %v307_v15 = vpack.c.bf16 %v299_v13, %v299_v13  ;;  %v1609_v16 = vld [vmem:[%s1838_s2 + $0x38] sm:$0xff]  }
  0x33   : > { %1409 = vmatpush3.bf16.msra.mxu1 %v1568_v23  ;;  %1388 = vmatprep.subr.bf16.mxu0 %v1569_v24  ;;  %v1608_v7 = vld [vmem:[#allocation2 + $0x180] sm:$0xff]   ;;  %v306_v10 = vpack.c.bf16 %v298_v8, %v298_v8  ;;  %v1610_v18 = vld [vmem:[%s1838_s2 + $0x30] sm:$0xff]   ;;  %v1611_v19 = vld [vmem:[%s1838_s2 + $0x28] sm:$0xff]  }
  0x34   : > { %1410 = vmatprep.subr.bf16.mxu1 %v1570_v25  ;;  %v297_v12 = vld [vmem:[%s1744_s14 + $0x20] sm:$0xff]  ;;  %v1613_v21 = vld [vmem:[%s1838_s2 + $0x18] sm:$0xff]   ;;  %v1614_v22 = vld [vmem:[%s1838_s2 + $0x10] sm:$0xff]   ;;  %s291_s14 = scalar_lea.vmem %s1843_s7, %s1289_s9 }
  0x35   : > { %v305_v14 = vpack.c.bf16 %v297_v12, %v297_v12  ;;  %v1612_v20 = vld [vmem:[%s1838_s2 + $0x20] sm:$0xff]   ;;  %v1615_v23 = vld [vmem:[%s1838_s2 + $0x8] sm:$0xff]   ;;  %v1617_v25 = vld [vmem:[%s1839_s3 + $0x38] sm:$0xff]  }
  0x36   : > { %1389 = vmatpush3.bf16.msra.mxu0 %v1571_v26  ;;  %v1616_v24 = vld [vmem:[%s1838_s2] sm:$0xff]   ;;  %v1618_v26 = vld [vmem:[%s1839_s3 + $0x30] sm:$0xff]  }
  0x37   : > { %1411 = vmatpush3.bf16.msra.mxu1 %v1572_v27  ;;  %1390 = vmatprep.subr.bf16.mxu0 %v1573_v28  ;;  %v1619_v27 = vld [vmem:[%s1839_s3 + $0x28] sm:$0xff]   ;;  %v1620_v28 = vld [vmem:[%s1839_s3 + $0x20] sm:$0xff]  }
  0x38   : > { %1412 = vmatprep.subr.bf16.mxu1 %v1574_v29  ;;  %v1621_v29 = vld [vmem:[%s1839_s3 + $0x18] sm:$0xff]  }
  0x3a   : > { %1391 = vmatpush3.bf16.msra.mxu0 %v1575_v30  ;;  %v1622_v30 = vld [vmem:[%s1839_s3 + $0x10] sm:$0xff]  }
  0x3b   : > { %1413 = vmatpush3.bf16.msra.mxu1 %v1576_v31  ;;  %1420 = vmatprep.subr.bf16.mxu0 %v1577_v40  ;;  %v1290_v40 = vld [vmem:[%s1840_s4] ss:$0 sm:$0xff] }
  0x3c   : > { %1442 = vmatprep.subr.bf16.mxu1 %v1578_v41 }
  0x3d   : > { %861 = vmatmul.mubr.bf16.vlgmr.msra.gmra.mxu0 %v301_v37 }
  0x3e   : > { %901 = vmatmul.mubr.bf16.vlgmr.msra.gmra.mxu1 %v303_v39  ;;  %1421 = vmatpush3.bf16.msra.mxu0 %v1579_v42 }
  0x3f   : > { %1443 = vmatpush3.bf16.msra.mxu1 %v1580_v43  ;;  %1422 = vmatprep.subr.bf16.mxu0 %v1581_v44 }
  0x40   : > { %1444 = vmatprep.subr.bf16.mxu1 %v1582_v45  ;;  %940 = vmatprep.mubr.bf16.mxu0 %v306_v10 }
  0x41   : > { %980 = vmatprep.mubr.bf16.mxu1 %v308_v11 }
  0x42   : > { %1423 = vmatpush3.bf16.msra.mxu0 %v1583_v46 }
  0x43   : > { %1445 = vmatpush3.bf16.msra.mxu1 %v1584_v47  ;;  %1424 = vmatprep.subr.bf16.mxu0 %v1585_v48 }
  0x44   : > { %1446 = vmatprep.subr.bf16.mxu1 %v1586_v49 }
  0x46   : > { %1425 = vmatpush3.bf16.msra.mxu0 %v1587_v50 }
  0x47   : > { %1447 = vmatpush3.bf16.msra.mxu1 %v1588_v51  ;;  %1426 = vmatprep.subr.bf16.mxu0 %v1589_v52 }
  0x48   : > { %1448 = vmatprep.subr.bf16.mxu1 %v1590_v53 }
  0x4a   : > { %1427 = vmatpush3.bf16.msra.mxu0 %v1591_v54 }
  0x4b   : > { %1449 = vmatpush3.bf16.msra.mxu1 %v1592_v55  ;;  %1428 = vmatprep.subr.bf16.mxu0 %v1593_v56 }
  0x4c   : > { %1450 = vmatprep.subr.bf16.mxu1 %v1594_v57 }
  0x4e   : > { %1429 = vmatpush3.bf16.msra.mxu0 %v1595_v58  ;;  %v1623_v58 = vld [vmem:[%s1839_s3 + $0x8] sm:$0xff]  }
  0x4f   : > { %1451 = vmatpush3.bf16.msra.mxu1 %v1596_v59  ;;  %1430 = vmatprep.subr.bf16.mxu0 %v1597_v60  ;;  %v1624_v59 = vld [vmem:[%s1839_s3] sm:$0xff]  }
  0x50   : > { %1452 = vmatprep.subr.bf16.mxu1 %v1598_v61  ;;  %v1355_v60 = vld [vmem:[%s1841_s5] ss:$0 sm:$0xff] }
  0x52   : > { %1431 = vmatpush3.bf16.msra.mxu0 %v1599_v62 }
  0x53   : > { %1453 = vmatpush3.bf16.msra.mxu1 %v1600_v63  ;;  %1432 = vmatprep.subr.bf16.mxu0 %v1601_v0 }
  0x54   : > { %1454 = vmatprep.subr.bf16.mxu1 %v1602_v1 }
  0x56   : > { %1433 = vmatpush3.bf16.msra.mxu0 %v1603_v2 }
  0x57   : > { %1455 = vmatpush3.bf16.msra.mxu1 %v1604_v3  ;;  %1434 = vmatprep.subr.bf16.mxu0 %v1605_v4  ;;  %v1364_v4 = vld [vmem:[%s1842_s6] ss:$0 sm:$0xff] }
  0x58   : > { %1456 = vmatprep.subr.bf16.mxu1 %v1606_v5 }
  0x5a   : > { %1435 = vmatpush3.bf16.msra.mxu0 %v1607_v6 }
  0x5b   : > { %1457 = vmatpush3.bf16.msra.mxu1 %v1608_v7  ;;  %1482 = vmatprep.subr.bf16.mxu0 %v1666_v17 }
  0x5c   : > { %1502 = vmatprep.subr.bf16.mxu1 %v1666_v17 }
  0x5d   : > { %941 = vmatmul.mubr.bf16.vlgmr.msra.gmra.mxu0 %v305_v14 }
  0x5e   : > { %981 = vmatmul.mubr.bf16.vlgmr.msra.gmra.mxu1 %v307_v15  ;;  %1483 = vmatpush3.bf16.msra.mxu0 %v1609_v16 }
  0x5f   : > { %1484 = vmatprep.subr.bf16.mxu0 %v1666_v17  ;;  %1498 = vmatprep.mubr.msk.bf16.mxu0 %vm1667_vm0, %v1666_v17 }
  0x60   : > { %1518 = vmatprep.mubr.msk.bf16.mxu1 %vm1667_vm0, %v1666_v17  ;;  %1503 = vmatpush3.bf16.msra.mxu1 %v1617_v25 }
  0x61   : > { %1504 = vmatprep.subr.bf16.mxu1 %v1666_v17 }
  0x62   : > { %1485 = vmatpush3.bf16.msra.mxu0 %v1610_v18 }
  0x63   : > { %1486 = vmatprep.subr.bf16.mxu0 %v1666_v17 }
  0x64   : > { %1505 = vmatpush3.bf16.msra.mxu1 %v1618_v26 }
  0x65   : > { %1506 = vmatprep.subr.bf16.mxu1 %v1666_v17 }
  0x66   : > { %1487 = vmatpush3.bf16.msra.mxu0 %v1611_v19 }
  0x67   : > { %1488 = vmatprep.subr.bf16.mxu0 %v1666_v17 }
  0x68   : > { %1507 = vmatpush3.bf16.msra.mxu1 %v1619_v27 }
  0x69   : > { %1508 = vmatprep.subr.bf16.mxu1 %v1666_v17 }
  0x6a   : > { %1489 = vmatpush3.bf16.msra.mxu0 %v1612_v20 }
  0x6b   : > { %1490 = vmatprep.subr.bf16.mxu0 %v1666_v17 }
  0x6c   : > { %1509 = vmatpush3.bf16.msra.mxu1 %v1620_v28 }
  0x6d   : > { %1510 = vmatprep.subr.bf16.mxu1 %v1666_v17 }
  0x6e   : > { %1491 = vmatpush3.bf16.msra.mxu0 %v1613_v21 }
  0x6f   : > { %1492 = vmatprep.subr.bf16.mxu0 %v1666_v17 }
  0x70   : > { %1511 = vmatpush3.bf16.msra.mxu1 %v1621_v29 }
  0x71   : > { %1512 = vmatprep.subr.bf16.mxu1 %v1666_v17 }
  0x72   : > { %1493 = vmatpush3.bf16.msra.mxu0 %v1614_v22 }
  0x73   : > { %1494 = vmatprep.subr.bf16.mxu0 %v1666_v17 }
  0x74   : > { %1513 = vmatpush3.bf16.msra.mxu1 %v1622_v30 }
  0x75   : > { %1514 = vmatprep.subr.bf16.mxu1 %v1666_v17 }
  0x76   : > { %1495 = vmatpush3.bf16.msra.mxu0 %v1615_v23 }
  0x77   : > { %1496 = vmatprep.subr.bf16.mxu0 %v1666_v17 }
  0x78   : > { %1515 = vmatpush3.bf16.msra.mxu1 %v1623_v58 }
  0x79   : > { %1516 = vmatprep.subr.bf16.mxu1 %v1666_v17 }
  0x7a   : > { %1497 = vmatpush3.bf16.msra.mxu0 %v1616_v24 }
  0x7c   : > { %1517 = vmatpush3.bf16.msra.mxu1 %v1624_v59 }
  0xfd   : > { %v1392_v31 = vpop.f32.mrf.mxu0 }
  0xfe   : > { %v1414_v32 = vpop.f32.mrf.mxu1 }
  0xff   : > { %v1393_v33 = vpop.f32.mrf.mxu0 }
 0x100   : > { %v1415_v34 = vpop.f32.mrf.mxu1  ;;  %v1394_v39 = vadd.f32 %v1393_v33, %v1392_v31 }
 0x101   : > { %v1395_v35 = vpop.f32.mrf.mxu0  ;;  %v1416_v42 = vadd.f32 %v1415_v34, %v1414_v32 }
 0x102   : > { %v1417_v36 = vpop.f32.mrf.mxu1  ;;  %v863_v41 = vadd.f32 %v1394_v39, %v1290_v40 }
 0x103   : > { %v1396_v37 = vpop.f32.mrf.mxu0 }
 0x104   : > { %v1418_v38 = vpop.f32.mrf.mxu1  ;;  %v903_v46 = vadd.f32 %v1416_v42, %v863_v41 }
 0x11d   : > { %v1436_v43 = vpop.f32.mrf.mxu0 }
 0x11e   : > { %v1458_v44 = vpop.f32.mrf.mxu1 }
 0x11f   : > { %v1437_v45 = vpop.f32.mrf.mxu0 }
 0x120   : > { %v1438_v47 = vadd.f32 %v1437_v45, %v1436_v43  ;;  %v1459_v48 = vpop.f32.mrf.mxu1 }
 0x121   : > { %v1439_v49 = vpop.f32.mrf.mxu0  ;;  %v1460_v51 = vadd.f32 %v1459_v48, %v1458_v44 }
 0x122   : > { %v943_v50 = vadd.f32 %v1438_v47, %v903_v46  ;;  %v1461_v52 = vpop.f32.mrf.mxu1 }
 0x123   : > { %v1440_v53 = vpop.f32.mrf.mxu0 }
 0x124   : > { %v983_v54 = vadd.f32 %v1460_v51, %v943_v50  ;;  %v1462_v55 = vpop.f32.mrf.mxu1 }
 0x126   : > { %v988_v56 = vmax.f32 %v983_v54, 0.0 }
 0x128   : > { %v989_v57 = vpack.c.bf16 %v988_v56, %v988_v56 }
 0x12a   : > { %1499 = vmatmul.mubr.bf16.vlgmr.msra.gmra.mxu0 %v989_v57 }
 0x1ea   : > { %v1095_v61 = vpop.f32.mrf.mxu0 }
 0x1eb   : > { %v1096_v62 = vadd.f32 %v1355_v60, %v1095_v61 }
 0x1ec   : > { %v1500_v63 = vpop.f32.mrf.mxu0 }
 0x1ed   : > { %v1101_v0 = vmax.f32 %v1096_v62, 0.0 }
 0x1ee   : > { %v1098_v1 = vpop.f32.mrf.mxu0 }
 0x1ef   : > { %v1102_v2 = vpack.c.bf16 %v1101_v0, %v1101_v0 }
 0x1f0   : > { %v1501_v3 = vpop.f32.mrf.mxu0 }
 0x1f1   : > { %1519 = vmatmul.mubr.bf16.vlgmr.msra.gmra.mxu1 %v1102_v2 }
 0x2b1   : > { %v1208_v5 = vpop.f32.mrf.mxu1 }
 0x2b2   : > { %v1209_v6 = vadd.f32 %v1364_v4, %v1208_v5 }
 0x2b3   : > { %v1520_v7 = vpop.f32.mrf.mxu1 }
 0x2b4   : > { %1214 = vst [vmem:[%s291_s14] sm:$0xff] %v1209_v6 }
 0x2b5   : > { %v1211_v8 = vpop.f32.mrf.mxu1 }
 0x2b7   : > { %v1521_v9 = vpop.f32.mrf.mxu1 }
 0x2b8 PF: > { %s18_s24 = sadd.s32 1, %s1661_s24  }
 0x2b9   : > { %p15_p1 = scmp.ge.s32.totalorder %s18_s24, 4  }
 0x2bb   :  { %17 = sbr.rel (!%p15_p1) target bundleno = 1 (0x1), region = 83 }
 0x2c0   :  { %1234 = vsyncpa [#allocation3], 1 }
 0x2c1   :  { %1236 = vsyncpa [#allocation3 + $0x1], 1 }

</bundles_post_ra>
